<compile_context>
chip_gen: v7x
topology: tpu7x:2x2x1
jax: 0.10.0
libtpu: 0.0.40
codegen_flags: <defaults>
</compile_context>

<pallas_src>
import jax
import jax.numpy as jnp
from jax.experimental import pallas as pl
from jax.experimental.pallas import tpu as pltpu


# --------------------------------------------------------------------------- #
# Kernels
# --------------------------------------------------------------------------- #
def _mm_kernel_acc(a_ref, x_ref, o_ref, acc_ref):
    """Generic kernel: f32 VMEM accumulator, cast to o_ref dtype on last K step."""
    @pl.when(pl.program_id(3) == 0)
    def _():
        acc_ref[...] = jnp.zeros_like(acc_ref)

    acc_ref[...] += jnp.dot(a_ref[...], x_ref[...],
                            preferred_element_type=jnp.float32)

    @pl.when(pl.program_id(3) == pl.num_programs(3) - 1)
    def _():
        o_ref[...] = acc_ref[...].astype(o_ref.dtype)


def _mm_kernel_f32_out(a_ref, x_ref, o_ref):
    """f32-output kernel: accumulate directly in the resident output block."""
    @pl.when(pl.program_id(3) == 0)
    def _():
        o_ref[...] = jnp.zeros_like(o_ref)

    o_ref[...] += jnp.dot(a_ref[...], x_ref[...],
                          preferred_element_type=jnp.float32)


# --------------------------------------------------------------------------- #
# Tiling helpers
# --------------------------------------------------------------------------- #
def _round_up(x, m):
    return ((x + m - 1) // m) * m


def _pick_tile(dim, target, align):
    """Tile is a multiple of `align` (capped at `target`); the dim is padded up
    to a multiple of the tile so blocks are always layout-aligned."""
    target = max(align, _round_up(target, align))
    t = min(_round_up(dim, align), target)
    return t, _round_up(dim, t)


def _vmem_limit_bytes():
    # 48 MiB is safe on every generation (v7x has 64 MiB physical VMEM);
    # exploit v5e/v6e's 128 MiB when the hardware reports it.
    try:
        cap = pltpu.get_tpu_info().vmem_capacity_bytes
        if cap >= 100 * 1024 * 1024:
            return 96 * 1024 * 1024
    except Exception:
        pass
    return 48 * 1024 * 1024


# --------------------------------------------------------------------------- #
# Core batched matmul:  out[b] = A @ x3[b]
# --------------------------------------------------------------------------- #
def _matmul_3d(x3, A, *, tm, tn, tk, use_bf16):
    B, K, N = x3.shape
    M, Ka = A.shape
    assert Ka == K, f"contraction mismatch: A {A.shape} vs x {x3.shape}"
    # NOTE: integer inputs would hit the MXU path (no int MXU on v7x); this
    # module is used with floating-point tensors.
    out_dtype = jnp.result_type(A.dtype, x3.dtype)

    itemsizes = [2, 2] if use_bf16 else [jnp.dtype(A.dtype).itemsize,
                                         jnp.dtype(x3.dtype).itemsize,
                                         jnp.dtype(out_dtype).itemsize]
    m_align = {4: 8, 2: 16, 1: 32}.get(min(itemsizes), 8)

    tm_, Mp = _pick_tile(M, tm, m_align)   # sublane dim of A / out
    tn_, Np = _pick_tile(N, tn, 128)       # lane dim of x / out
    tk_, Kp = _pick_tile(K, tk, 128)       # lane dim of A, sublane dim of x

    # v7x megacore: make sure the parallel grid axes expose >= 2 blocks when
    # possible (both TensorCores busy).  No effect on single-TC chips.
    if B * (Mp // tm_) * (Np // tn_) < 2:
        if tm_ >= 2 * m_align:
            tm_ = _round_up((tm_ + 1) // 2, m_align)
            Mp = _round_up(M, tm_)
        elif tn_ >= 256:
            tn_ = _round_up(tn_ // 2, 128)
            Np = _round_up(N, tn_)

    # Zero-padding K is exact for matmul; padded M/N rows/cols are sliced off.
    A_p = A if (Mp == M and Kp == K) else jnp.pad(A, ((0, Mp - M), (0, Kp - K)))
    x_p = x3 if (Kp == K and Np == N) else jnp.pad(
        x3, ((0, 0), (0, Kp - K), (0, Np - N)))
    if use_bf16:
        A_p = A_p.astype(jnp.bfloat16)
        x_p = x_p.astype(jnp.bfloat16)

    gm, gn, gk = Mp // tm_, Np // tn_, Kp // tk_
    grid = (B, gm, gn, gk)

    f32_out = out_dtype == jnp.float32
    kernel = _mm_kernel_f32_out if f32_out else _mm_kernel_acc
    scratch = [] if f32_out else [pltpu.VMEM((tm_, tn_), jnp.float32)]

    a_bytes = A_p.size * A_p.dtype.itemsize
    x_bytes = x_p.size * x_p.dtype.itemsize
    out_bytes = B * Mp * Np * jnp.dtype(out_dtype).itemsize
    cost = pl.CostEstimate(
        flops=2 * B * Mp * Np * Kp,
        transcendentals=0,
        bytes_accessed=a_bytes * B * gn + x_bytes * gm + out_bytes,
    )

    out = pl.pallas_call(
        kernel,
        out_shape=jax.ShapeDtypeStruct((B, Mp, Np), out_dtype),
        grid_spec=pltpu.PrefetchScalarGridSpec(
            num_scalar_prefetch=0,
            grid=grid,
            in_specs=[
                pl.BlockSpec((tm_, tk_), lambda b, i, j, k: (i, k)),
                pl.BlockSpec((None, tk_, tn_), lambda b, i, j, k: (b, k, j)),
            ],
            out_specs=pl.BlockSpec((None, tm_, tn_), lambda b, i, j, k: (b, i, j)),
            scratch_shapes=scratch,
        ),
        compiler_params=pltpu.CompilerParams(
            dimension_semantics=("parallel", "parallel", "parallel", "arbitrary"),
            vmem_limit_bytes=_vmem_limit_bytes(),
        ),
        cost_estimate=cost,
    )(A_p, x_p)

    if (Mp, Np) != (M, N):
        out = out[:, :M, :N]
    return out


# --------------------------------------------------------------------------- #
# Public wrapper: torch.matmul(A, x)
# --------------------------------------------------------------------------- #
def pallas_matmul(x, A, *, tm=512, tn=512, tk=1024, use_bf16=False):
    """Equivalent of torch.matmul(A, x) for 2-D A and 2-D or 3-D x."""
    assert A.ndim == 2, "A must be (M, K)"
    M, K = A.shape

    if x.ndim == 2:
        assert x.shape[0] == K
        return _matmul_3d(x[None], A, tm=tm, tn=tn, tk=tk, use_bf16=use_bf16)[0]

    assert x.ndim == 3, "supported: x (K, N) or (B, K, N)"
    B, Kx, N = x.shape
    assert Kx == K

    if N < 128 and B > 1:
        # Small N: fold batch into the lane axis so the output stays lane-dense
        # (one big 2-D matmul), then unfold.  Column index = b * N + n.
        x2d = jnp.transpose(x, (1, 0, 2)).reshape(K, B * N)
        out2d = _matmul_3d(x2d[None], A, tm=tm, tn=tn, tk=tk,
                           use_bf16=use_bf16)[0]
        return out2d.reshape(M, B, N).transpose(1, 0, 2)

    # Lane-dense N: batched grid, no wrapper-side copies of x or the output.
    return _matmul_3d(x, A, tm=tm, tn=tn, tk=tk, use_bf16=use_bf16)


# --------------------------------------------------------------------------- #
# Self-test
# --------------------------------------------------------------------------- #
if __name__ == "__main__":
    key = jax.random.PRNGKey(0)
    k_a, k_x, k_a2, k_x2 = jax.random.split(key, 4)

    # Test 1: batched x, small N -> batch-fold (lane-dense) path.
    B, M, K, N = 2, 16, 32, 48
    A = jax.random.normal(k_a, (M, K), dtype=jnp.float32)
    x = jax.random.normal(k_x, (B, K, N), dtype=jnp.float32)
    out = pallas_matmul(x, A)
    jax.block_until_ready(out)
    ref = jnp.einsum("mk,bkn->bmn", A, x)
    assert out.shape == ref.shape == (B, M, N)
    assert jnp.allclose(out, ref, atol=1e-3, rtol=1e-3)

    # Test 2: batched lane-dense path (no wrapper copies) with small tiles to
    # exercise the multi-block K-accumulation path.  Grid = (2, 2, 1, 2).
    B2, M2, K2, N2 = 2, 16, 256, 128
    A2 = jax.random.normal(k_a2, (M2, K2), dtype=jnp.float32)
    x2 = jax.random.normal(k_x2, (B2, K2, N2), dtype=jnp.float32)
    out2 = pallas_matmul(x2, A2, tm=8, tn=128, tk=128)
    jax.block_until_ready(out2)
    ref2 = jnp.einsum("mk,bkn->bmn", A2, x2)
    assert out2.shape == ref2.shape == (B2, M2, N2)
    assert jnp.allclose(out2, ref2, atol=1e-2, rtol=1e-2)

    # Test 3: plain 2-D x (torch.matmul(A, x) of two matrices).
    x2d = jax.random.normal(k_x, (K, N), dtype=jnp.float32)
    out3 = pallas_matmul(x2d, A)
    jax.block_until_ready(out3)
    ref3 = A @ x2d
    assert out3.shape == (M, N)
    assert jnp.allclose(out3, ref3, atol=1e-3, rtol=1e-3)

    # Test 4: opt-in bf16 fast path (f32 inputs, f32 accumulation / output).
    out4 = pallas_matmul(x, A, use_bf16=True)
    jax.block_until_ready(out4)
    assert jnp.allclose(out4, ref, atol=3e-1, rtol=5e-2)

    # Test 5: native bf16 inputs (exercises the f32-acc-scratch kernel).
    out5 = pallas_matmul(x.astype(jnp.bfloat16), A.astype(jnp.bfloat16))
    jax.block_until_ready(out5)
    assert jnp.allclose(out5.astype(jnp.float32), ref, atol=5e-1, rtol=1e-1)

    print("KERNEL_OK")
</pallas_src>

<mosaic_0001>
module attributes {stable_mosaic.version = 11 : i64} {
  func.func @_mm_kernel_f32_out(%arg0: i32, %arg1: i32, %arg2: i32, %arg3: i32, %arg4: memref<8x128xf32, #tpu.memory_space<vmem>>, %arg5: memref<1x128x128xf32, #tpu.memory_space<vmem>>, %arg6: memref<1x8x128xf32, #tpu.memory_space<vmem>>) attributes {dimension_semantics = [#tpu.dimension_semantics<parallel>, #tpu.dimension_semantics<parallel>, #tpu.dimension_semantics<parallel>, #tpu.dimension_semantics<arbitrary>], iteration_bounds = array<i64: 1, 2, 1, 1>, scalar_prefetch = 0 : i64, scratch_operands = 0 : i64, tpu.core_type = #tpu.core_type<tc>, window_params = [{transform_indices = @transform_0, window_bounds = array<i64: 8, 128>}, {transform_indices = @transform_1, window_bounds = array<i64: 1, 128, 128>}, {transform_indices = @transform_2, window_bounds = array<i64: 1, 8, 128>}]} {
    %c0_i32 = arith.constant 0 : i32
    %0 = arith.cmpi eq, %arg3, %c0_i32 : i32
    %1 = arith.extui %0 : i1 to i32
    %c0_i32_0 = arith.constant 0 : i32
    %2 = arith.cmpi ne, %1, %c0_i32_0 : i32
    scf.if %2 {
      %cst_11 = arith.constant 0.000000e+00 : f32
      %13 = vector.broadcast %cst_11 : f32 to vector<8x128xf32>
      %c0_12 = arith.constant 0 : index
      %c0_13 = arith.constant 0 : index
      %c0_14 = arith.constant 0 : index
      %14 = vector.load %arg6[%c0_12, %c0_13, %c0_14] : memref<1x8x128xf32, #tpu.memory_space<vmem>>, vector<1x8x128xf32>
      %15 = vector.shape_cast %14 : vector<1x8x128xf32> to vector<8x128xf32>
      %16 = vector.shape_cast %13 : vector<8x128xf32> to vector<1x8x128xf32>
      tpu.vector_store %arg6[%c0_12, %c0_13, %c0_14], %16 {strides = array<i32>} : memref<1x8x128xf32, #tpu.memory_space<vmem>>, vector<1x8x128xf32>,
    } else {
    }
    %c0 = arith.constant 0 : index
    %c0_1 = arith.constant 0 : index
    %c0_2 = arith.constant 0 : index
    %3 = vector.load %arg6[%c0, %c0_1, %c0_2] : memref<1x8x128xf32, #tpu.memory_space<vmem>>, vector<1x8x128xf32>
    %4 = vector.shape_cast %3 : vector<1x8x128xf32> to vector<8x128xf32>
    %c0_3 = arith.constant 0 : index
    %c0_4 = arith.constant 0 : index
    %5 = vector.load %arg4[%c0_3, %c0_4] : memref<8x128xf32, #tpu.memory_space<vmem>>, vector<8x128xf32>
    %c0_5 = arith.constant 0 : index
    %c0_6 = arith.constant 0 : index
    %c0_7 = arith.constant 0 : index
    %6 = vector.load %arg5[%c0_5, %c0_6, %c0_7] : memref<1x128x128xf32, #tpu.memory_space<vmem>>, vector<1x128x128xf32>
    %7 = vector.shape_cast %6 : vector<1x128x128xf32> to vector<128x128xf32>
    %cst = arith.constant dense<0.000000e+00> : vector<8x128xf32>
    %8 = tpu.matmul %5, %7, %cst {dimension_numbers = #tpu.dot_dimension_numbers<[1], [0], [0], [1], [0, 0, 1, 1], [], []>} : vector<8x128xf32>, vector<128x128xf32>, vector<8x128xf32> -> vector<8x128xf32>
    %9 = arith.addf %4, %8 : vector<8x128xf32>
    %c0_8 = arith.constant 0 : index
    %c0_9 = arith.constant 0 : index
    %c0_10 = arith.constant 0 : index
    %10 = vector.load %arg6[%c0_8, %c0_9, %c0_10] : memref<1x8x128xf32, #tpu.memory_space<vmem>>, vector<1x8x128xf32>
    %11 = vector.shape_cast %10 : vector<1x8x128xf32> to vector<8x128xf32>
    %12 = vector.shape_cast %9 : vector<8x128xf32> to vector<1x8x128xf32>
    tpu.vector_store %arg6[%c0_8, %c0_9, %c0_10], %12 {strides = array<i32>} : memref<1x8x128xf32, #tpu.memory_space<vmem>>, vector<1x8x128xf32>,
    return
  }
  func.func @transform_0(%arg0: i32, %arg1: i32, %arg2: i32, %arg3: i32) -> (i32, i32) {
    %c0_i32 = arith.constant 0 : i32
    return %arg1, %arg3 : i32, i32
  }
  func.func @transform_1(%arg0: i32, %arg1: i32, %arg2: i32, %arg3: i32) -> (i32, i32, i32) {
    %c0_i32 = arith.constant 0 : i32
    return %arg0, %arg3, %arg2 : i32, i32, i32
  }
  func.func @transform_2(%arg0: i32, %arg1: i32, %arg2: i32, %arg3: i32) -> (i32, i32, i32) {
    %c0_i32 = arith.constant 0 : i32
    return %arg0, %arg1, %arg2 : i32, i32, i32
  }
}

</mosaic_0001>

<bundles_post_ra>
// kernel: tpu_custom_call.1
= control target key start
LH: loop header
LB: loop body
LE: loop exit
PB: predicated region body
PF: predicated region fallthrough
CT: control target
= control target key end

     0   :  { %7 = vsyncpa [#allocation3], 0  ;;  %s998_s0 = inlined_call_operand.hbm [shape: f32[16,128], index: 0, kind: input, shape index: {}]   ;;  %s999_s1 = inlined_call_operand.hbm [shape: f32[1,128,128], index: 1, kind: input, shape index: {}]   ;;  %s1000_s2 = inlined_call_operand.hbm [shape: f32[1,16,128], index: 2, kind: output, shape index: {}]  }
   0x1   :  { %9 = vsyncpa [#allocation3 + $0x1], 0 }
   0x2   :  { %10 = vsyncpa [#allocation6], 0 }
   0x3   :  { %11 = vsyncpa [#allocation4], 0 }
   0x4   :  { %13 = vsyncpa [#allocation4 + $0x1], 0  ;;  %s777_s9 = smov 0   ;;  %s779_s10 = smov 0  }
   0x5   :  { %s781_s11 = smov 0   ;;  %s783_s12 = smov 0  }
   0x6   :  { %s785_s13 = smov 0   ;;  %s787_s14 = smov 0  }
   0x7 LB: > { %s439_s15 = sadd.s32 4294967295, %s752_s14   ;;  %s440_s16 = sadd.s32 4294967294, %s752_s14   ;;  %s752_s14 = sphi %s787_s14, %s19_s14   ;;  %s748_s13 = sphi %s785_s13, %s1024_s13   ;;  %s744_s12 = sphi %s783_s12, %s1023_s12   ;;  %s740_s11 = sphi %s781_s11, %s1022_s11   ;;  %s736_s10 = sphi %s779_s10, %s1021_s10   ;;  %s732_s9 = sphi %s777_s9, %s1020_s9  }
   0x8   : > { %p67_p0 = scmp.ne.s32.totalorder %s736_s10, %s732_s9  ;;  %p811_p1 = scmp.eq.s32.totalorder %s439_s15, 0 }
   0x9   : > { %p815_p2 = scmp.eq.s32.totalorder %s439_s15, 1  ;;  %p131_p3 = scmp.eq.s32.totalorder %s440_s16, 1 }
   0xa   : > { %s1005_s17 = scalar_select %p811_p1, 1, 0 }
   0xb   : > { %s1006_s18 = scalar_select %p815_p2, 1, 0 }
   0xc   : > { %p821_p4 = por %p811_p1, %p67_p0  ;;  %p441_p5 = scmp.ge.s32.totalorder %s752_s14, 1 }
   0xd   : > { %p826_p6 = por %p131_p3, %p67_p0  ;;  %p138_p7 = scmp.lt.s32.totalorder %s752_s14, 3 }
   0xe   : > { %s1007_s19 = scalar_select %p821_p4, 1, 0 }
   0xf   : > { %s1008_s20 = scalar_select %p826_p6, 1, 0 }
  0x10   : > { %p831_p8 = pnand %p441_p5, %p138_p7  ;;  %s754_s22 = smov [#allocation5]  }
  0x11   : > { %s156_s23 = sshll.u32 %s754_s22, 4  ;;  %s41_s25 = sadd.s32 1, %s748_s13  ;;  %s157_s23 = int_to_ptr.vmem [resolvable:$true] %s156_s23 }
  0x12   : > { %s1009_s21 = scalar_select %p831_p8, 1, 0 }
  0x13   : > { %p538_p9 = pneg %p831_p8  ;;  %s608_s28 = scalar_lea.hbm %s999_s1, 2048 }
  0x14   : > { %p609_p12 = scmp.ne.s32.totalorder %s999_s1, %s608_s28  ;;  %p615_p5 = scmp.lt.u32.totalorder %s608_s28, %s999_s1 }
  0x15   : > { %p840_p11 = pnand %p538_p9, %p811_p1 }
  0x17   : > { %p610_p13 = pneg %p840_p11 }
  0x19   : > { %p611_p0 = pnand %p610_p13, %p609_p12 }
  0x1b   : > { %p612_p3 = pneg %p611_p0 }
  0x1d   : > { %p617_p7 = pnand %p615_p5, %p612_p3 }
  0x1f   : > { %620 = shalt.err (!%p617_p7)
}
  0x20   : > { %s621_s5 = scalar_lea.vmem %s157_s23, 2048  ;;  %p629_p1 = scmp.lt.s32.totalorder %s157_s23, %s157_s23 }
  0x21   : > { %p622_p9 = scmp.ne.s32.totalorder %s157_s23, %s621_s5  ;;  %p630_p4 = scmp.lt.s32.totalorder %s621_s5, %s621_s5 }
  0x23   : > { %p624_p10 = pnand %p622_p9, %p610_p13  ;;  %p631_p8 = por %p630_p4, %p629_p1 }
  0x25   : > { %p625_p6 = pneg %p624_p10 }
  0x27   : > { %p632_p2 = pnand %p631_p8, %p625_p6 }
  0x29   : > { %635 = shalt.err (!%p632_p2)
}
  0x2a   : > { %s755_s6 = smov 128   ;;  %s756_s7 = smov 8  }
  0x2b   : > { %541 = dma.hbm_to_vmem [thread:$0]  (!%p840_p11), %s999_s1, 2048, %s157_s23, [#allocation6], %s755_s6, %s755_s6, %s756_s7  }
  0x2c   : > { %p43_p1 = scmp.ge.s32.totalorder %s41_s25, 2  ;;  %s54_s16 = sadd.s32 1, %s740_s11 }
  0x2d   : > { %p61_p2 = scmp.ne.s32.totalorder %s740_s11, %s736_s10  ;;  %p62_p4 = scmp.eq.s32.totalorder %s752_s14, 0 }
  0x2e   : > { %s1026_s25 = smov (%p43_p1, %s41_s25), 0  ;;  %p1012_p8 = scmp.ne.s32.totalorder %s1006_s18, 0 }
  0x2f   : > { %p867_p6 = por %p62_p4, %p61_p2  ;;  %s49_s24 = ssub.s32 %s748_s13, %s1026_s25 }
  0x30   : > { %p873_p10 = por %p1012_p8, %p61_p2  ;;  %p551_p12 = scmp.lt.s32.totalorder %s752_s14, 2 }
  0x31   : > { %p52_p11 = scmp.eq.s32.totalorder %s49_s24, 0  ;;  %s170_s23 = sand.u32 1, %s740_s11  }
  0x32   : > { %s444_s27 = sshll.u32 %s170_s23, 3  ;;  %s445_s29 = sshll.u32 %s748_s13, 7 }
  0x33   : > { %s882_s28 = scalar_select %p52_p11, %s740_s11, %s54_s16  }
  0x34   : > { %s888_s4 = scalar_lea.hbm %s998_s0, %s445_s29  ;;  %s174_s18 = scalar_lea.vmem [#allocation2], %s444_s27 }
  0x35   : > { %s182_s5 = sshll.u32 %s174_s18, 4  ;;  %p894_p13 = pnand %p551_p12, %p867_p6  ;;  %s890_s5 = int_to_ptr.vmem [resolvable:$true] %s182_s5 }
  0x36   : > { %s171_s7 = scalar_lea.sflag [#allocation3], %s170_s23  ;;  %s636_s8 = scalar_lea.hbm %s888_s4, 128 }
  0x37   : > { %p637_p0 = scmp.ne.s32.totalorder %s888_s4, %s636_s8  ;;  %p638_p3 = pneg %p894_p13 }
  0x38   : > { %s641_s24 = scalar_lea.hbm %s998_s0, 256  ;;  %p642_p9 = scmp.lt.u32.totalorder %s888_s4, %s998_s0 }
  0x39   : > { %p639_p5 = pnand %p638_p3, %p637_p0  ;;  %p643_p1 = scmp.lt.u32.totalorder %s641_s24, %s636_s8 }
  0x3a   : > { %p645_p4 = scmp.lt.u32.totalorder %s636_s8, %s888_s4 }
  0x3b   : > { %p640_p7 = pneg %p639_p5  ;;  %p644_p2 = por %p643_p1, %p642_p9 }
  0x3d   : > { %p646_p6 = por %p645_p4, %p644_p2 }
  0x3f   : > { %p647_p8 = pnand %p646_p6, %p640_p7 }
  0x41   : > { %650 = shalt.err (!%p647_p8)
}
  0x42   : > { %s651_s23 = scalar_lea.vmem %s890_s5, 128  ;;  %s757_s29 = smov [#allocation2]  }
  0x43   : > { %p652_p12 = scmp.ne.s32.totalorder %s890_s5, %s651_s23  ;;  %s656_s30 = sshll.u32 %s757_s29, 4  ;;  %s657_s30 = int_to_ptr.vmem [resolvable:$false] %s656_s30 }
  0x44   : > { %s658_s3 = scalar_lea.vmem %s657_s30, 256  ;;  %p659_p5 = scmp.lt.s32.totalorder %s890_s5, %s657_s30 }
  0x45   : > { %p654_p11 = pnand %p652_p12, %p638_p3  ;;  %p660_p9 = scmp.lt.s32.totalorder %s658_s3, %s651_s23 }
  0x47   : > { %p655_p0 = pneg %p654_p11  ;;  %p661_p1 = por %p660_p9, %p659_p5 }
  0x49   : > { %p662_p2 = pnand %p661_p1, %p655_p0 }
  0x4b   : > { %665 = shalt.err (!%p662_p2)
}
  0x4c   : > { %545 = dma.hbm_to_vmem [thread:$0]  (!%p894_p13), %s888_s4, 128, %s890_s5, %s171_s7  }
  0x4d   : > { %p1015_p7 = scmp.ne.s32.totalorder %s1009_s21, 0 }
  0x4e   : > { %s926_s18 = sand.u32 (!%p1015_p7), 1, %s736_s10   ;;  %p1016_p3 = scmp.ne.s32.totalorder (!%p1015_p7), %s1007_s19, 0 }
  0x4f   : > { %191 = sbr.rel (%p1015_p7) target bundleno = 351 (0x15f), region = 28  ;;  %s447_s8 = sshll.u32 (!%p1015_p7), %s926_s18, 3 }
  0x50   : > { %s194_s15 = scalar_lea.sflag (!%p1015_p7), [#allocation3], %s926_s18  ;;  %s932_s16 = scalar_lea.vmem (!%p1015_p7), [#allocation2], %s447_s8 }
  0x56   : > { %719 = dma.done.wait (%p1016_p3), %s194_s15, 128  }
  0x57   : > { %721 = vsyncadd (%p1016_p3), %s194_s15, 4294967168  ;;  %p1017_p13 = scmp.ne.s32.totalorder %s1005_s17, 0 }
  0x59   : > { %723 = dma.done.wait (%p1017_p13), [#allocation6], 2048  }
  0x5a   : > { %725 = vsyncadd (%p1017_p13), [#allocation6], 4294965248  ;;  %v758_v0 = vmov 0.0|0.0   ;;  %vm759_vm0 = vmmov 0   ;;  %v760_v1 = vmov 0.0   ;;  %v230_v2 = vld [vmem:[#allocation5] sm:$0xff] }
  0x5b   : > { %506 = vmatprep.subr.bf16.mxu0 %v758_v0  ;;  %503 = vmatprep.mubr.msk.f32.mxu0 %vm759_vm0, %v760_v1  ;;  %v231_v3 = vld [vmem:[#allocation5 + $0x8] sm:$0xff]  ;;  %v232_v4 = vld [vmem:[#allocation5 + $0x10] sm:$0xff]  ;;  %v233_v6 = vld [vmem:[#allocation5 + $0x18] sm:$0xff]  ;;  %s451_s17 = sshll.u32 %s744_s12, 7  ;;  %s221_s19 = scalar_lea.vmem [#allocation7], %s447_s8 }
  0x5c   : > { %v507_v5 = vpack.c.bf16 %v231_v3, %v230_v2  ;;  %v510_v7 = vpack.c.bf16 %v233_v6, %v232_v4  ;;  %v234_v8 = vld [vmem:[#allocation5 + $0x20] sm:$0xff]  ;;  %v235_v9 = vld [vmem:[#allocation5 + $0x28] sm:$0xff]  ;;  %v236_v11 = vld [vmem:[#allocation5 + $0x30] sm:$0xff]  ;;  %s335_s21 = sshll.u32 %s221_s19, 4  ;;  %s949_s6 = scalar_lea.hbm %s1000_s2, %s451_s17  ;;  %s951_s21 = int_to_ptr.vmem [resolvable:$true] %s335_s21 }
  0x5d   : > { %v513_v10 = vpack.c.bf16 %v235_v9, %v234_v8  ;;  %v237_v12 = vld [vmem:[#allocation5 + $0x38] sm:$0xff]  ;;  %v238_v14 = vld [vmem:[#allocation5 + $0x40] sm:$0xff]  ;;  %v239_v15 = vld [vmem:[#allocation5 + $0x48] sm:$0xff]  ;;  %s319_s7 = scalar_lea.sflag [#allocation4], %s926_s18  ;;  %s666_s24 = scalar_lea.vmem %s951_s21, 128 }
  0x5e   : > { %508 = vmatpush3.bf16.msra.mxu0 %v507_v5  ;;  %v516_v13 = vpack.c.bf16 %v237_v12, %v236_v11  ;;  %v519_v16 = vpack.c.bf16 %v239_v15, %v238_v14  ;;  %v240_v17 = vld [vmem:[#allocation5 + $0x50] sm:$0xff]  ;;  %v241_v18 = vld [vmem:[#allocation5 + $0x58] sm:$0xff]  ;;  %v242_v20 = vld [vmem:[#allocation5 + $0x60] sm:$0xff]  ;;  %p667_p4 = scmp.ne.s32.totalorder %s951_s21, %s666_s24  ;;  %s761_s12 = smov [#allocation7]  }
  0x5f   : > { %509 = vmatprep.subr.bf16.mxu0 %v758_v0  ;;  %v522_v19 = vpack.c.bf16 %v241_v18, %v240_v17  ;;  %v243_v21 = vld [vmem:[#allocation5 + $0x68] sm:$0xff]  ;;  %v244_v23 = vld [vmem:[#allocation5 + $0x70] sm:$0xff]  ;;  %v245_v24 = vld [vmem:[#allocation5 + $0x78] sm:$0xff]  ;;  %s670_s22 = sshll.u32 %s761_s12, 4  ;;  %s671_s22 = int_to_ptr.vmem [resolvable:$false] %s670_s22 }
  0x60   : > { %v525_v22 = vpack.c.bf16 %v243_v21, %v242_v20  ;;  %v528_v25 = vpack.c.bf16 %v245_v24, %v244_v23  ;;  %v229_v26 = vld [vmem:[%s932_s16] sm:$0xff]  ;;  %p668_p6 = pnand %p667_p4, %p873_p10  ;;  %s672_s27 = scalar_lea.vmem %s671_s22, 256 }
  0x61   : > { %p673_p12 = scmp.lt.s32.totalorder %s951_s21, %s671_s22  ;;  %p674_p11 = scmp.lt.s32.totalorder %s672_s27, %s666_s24 }
  0x62   : > { %511 = vmatpush3.bf16.msra.mxu0 %v510_v7  ;;  %p669_p8 = pneg %p668_p6 }
  0x63   : > { %512 = vmatprep.subr.bf16.mxu0 %v758_v0  ;;  %p675_p0 = por %p674_p11, %p673_p12 }
  0x65   : > { %p676_p5 = pnand %p675_p0, %p669_p8 }
  0x66   : > { %514 = vmatpush3.bf16.msra.mxu0 %v513_v10 }
  0x67   : > { %515 = vmatprep.subr.bf16.mxu0 %v758_v0 }
  0x6a   : > { %517 = vmatpush3.bf16.msra.mxu0 %v516_v13 }
  0x6b   : > { %518 = vmatprep.subr.bf16.mxu0 %v758_v0 }
  0x6e   : > { %520 = vmatpush3.bf16.msra.mxu0 %v519_v16 }
  0x6f   : > { %521 = vmatprep.subr.bf16.mxu0 %v758_v0 }
  0x72   : > { %523 = vmatpush3.bf16.msra.mxu0 %v522_v19 }
  0x73   : > { %524 = vmatprep.subr.bf16.mxu0 %v758_v0 }
  0x76   : > { %526 = vmatpush3.bf16.msra.mxu0 %v525_v22 }
  0x77   : > { %527 = vmatprep.subr.bf16.mxu0 %v758_v0 }
  0x7a   : > { %529 = vmatpush3.bf16.msra.mxu0 %v528_v25 }
  0x7d   : > { %504 = vmatmul.mubr.f32.vlgmr.msra.gmra.mrb[0].mxu0 %v229_v26 }
 0x150   : > { %v312_v27 = vpop.f32.mrb[0].mxu0 }
 0x151   : > { %v505_v28 = vpop.f32.mrb[1].mxu0  ;;  %317 = vst [vmem:[%s221_s19] sm:$0xff] %v312_v27 }
 0x152   : > { %679 = shalt.err (!%p676_p5)
}
 0x153   : > { %s680_s23 = scalar_lea.hbm %s949_s6, 128  ;;  %s684_s3 = scalar_lea.hbm %s1000_s2, 256 }
 0x154   : > { %p681_p9 = scmp.ne.s32.totalorder %s949_s6, %s680_s23  ;;  %p685_p7 = scmp.lt.u32.totalorder %s949_s6, %s1000_s2 }
 0x155   : > { %p686_p3 = scmp.lt.u32.totalorder %s684_s3, %s680_s23  ;;  %p688_p4 = scmp.lt.u32.totalorder %s680_s23, %s949_s6 }
 0x156   : > { %p682_p1 = pnand %p681_p9, %p873_p10 }
 0x157   : > { %p687_p13 = por %p686_p3, %p685_p7 }
 0x158   : > { %p683_p2 = pneg %p682_p1 }
 0x159   : > { %p689_p6 = por %p688_p4, %p687_p13 }
 0x15b   : > { %p690_p8 = pnand %p689_p6, %p683_p2 }
 0x15d   : > { %693 = shalt.err (!%p690_p8)
}
 0x15e   : > { %536 = dma.vmem_to_hbm [thread:$0]  (%p873_p10), %s951_s21, 128, %s949_s6, %s319_s7  }
 0x15f PF: > { %s347_s15 = sand.u32 1, %s732_s9   ;;  %p1018_p12 = scmp.ne.s32.totalorder %s1008_s20, 0 }
 0x160   : > { %p1019_p11 = scmp.ge.s32.totalorder %s752_s14, 2  ;;  %s348_s16 = scalar_lea.sflag [#allocation4], %s347_s15 }
 0x162   : > { %p547_p0 = pnand %p1019_p11, %p1018_p12 }
 0x164   : > { %727 = dma.done.wait (!%p547_p0), %s348_s16, 128  }
 0x165   : > { %729 = vsyncadd (!%p547_p0), %s348_s16, 4294967168  ;;  %s19_s14 = sadd.s32 1, %s752_s14   ;;  %s1020_s9 = smov %s736_s10 }
 0x166   : > { %p16_p5 = scmp.ge.s32.totalorder %s19_s14, 4   ;;  %s1021_s10 = smov %s740_s11 }
 0x167   : > { %s1022_s11 = smov %s882_s28  ;;  %s1023_s12 = smov %s748_s13 }
 0x168   : > { %s1024_s13 = smov %s1026_s25  ;;  %18 = sbr.rel (!%p16_p5) target bundleno = 7 (0x7), region = 82 }
 0x16f   :  { %353 = vsyncpa [#allocation3], 1 }
 0x170   :  { %355 = vsyncpa [#allocation3 + $0x1], 1 }
 0x171   :  { %356 = vsyncpa [#allocation6], 1 }
 0x172   :  { %357 = vsyncpa [#allocation4], 1 }
 0x173   :  { %359 = vsyncpa [#allocation4 + $0x1], 1 }

</bundles_post_ra>
